<compile_context>
chip_gen: v7x
topology: tpu7x:2x2x1
jax: 0.10.0
libtpu: 0.0.40
codegen_flags: <defaults>
</compile_context>

<pallas_src>
import functools
import math

import jax
import jax.numpy as jnp
from jax.experimental import pallas as pl
from jax.experimental.pallas import tpu as pltpu


_LANE = 128      # lane width  (last dim)
_SUBLANE = 8     # sublane width (second-to-last dim)


def _round_up(x, m):
    return ((x + m - 1) // m) * m


def _apply_activation(h, act):
    if act is None:
        return h
    if act == "relu":
        return jnp.maximum(h, 0.0)
    if act == "tanh":
        return jnp.tanh(h)
    if act == "leakyrelu":
        return jnp.where(h >= 0.0, h, 0.2 * h)
    raise ValueError(f"unknown activation {act!r}")


def _mlp_fused_kernel(*refs, activations):
    """Fused forward over all layers for one (tm, K0) row tile.

    refs = (x_ref, w0_ref, b0_ref, w1_ref, b1_ref, ..., o_ref)
    """
    x_ref = refs[0]
    o_ref = refs[-1]
    wb_refs = refs[1:-1]

    h = x_ref[...]
    for layer, act in enumerate(activations):
        w = wb_refs[2 * layer][...]
        b = wb_refs[2 * layer + 1][...]
        # MXU matmul with f32 accumulation; bias add + nonlinearity in f32.
        h = jnp.dot(h.astype(w.dtype), w, preferred_element_type=jnp.float32)
        h = h + b.astype(jnp.float32)          # (1, N) broadcasts over rows
        h = _apply_activation(h, act)
        # TODO(synk): training-mode dropout (drop_ratio > 0) would go here via
        # pltpu.prng_seed / pltpu.prng_random_bits; eval mode is the identity.
    o_ref[...] = h.astype(o_ref.dtype)


def mlp_forward(x, params, activs, *, compute_dtype=None, row_tile=256):
    """Fused MLP forward: one pallas_call for the whole layer stack.

    x:      [batch, in_features]   (arbitrary batch; padded internally)
    params: list of (W [in, out], b [1, out])  (W transposed vs nn.Linear)
    activs: list of 'relu' | 'tanh' | 'leakyrelu' | None, one per layer
    compute_dtype: optional cast for x / W (e.g. jnp.bfloat16); accumulation
                   and nonlinearities always stay in float32.
    """
    assert len(params) == len(activs)
    M, K0 = x.shape
    out_features = params[-1][0].shape[1]

    # ---- pad rows & features to hardware-friendly sizes --------------------
    tm = min(row_tile, _round_up(M, _SUBLANE))      # MXU-sized row tile
    m_pad = _round_up(M, tm)

    k0_pad = _round_up(K0, _LANE)
    x_pad = jnp.zeros((m_pad, k0_pad), x.dtype).at[:M, :K0].set(x)
    if compute_dtype is not None:
        x_pad = x_pad.astype(compute_dtype)

    padded = []
    in_pad = k0_pad
    for (w, b) in params:
        k, n = w.shape
        n_pad = _round_up(n, _LANE)
        w_p = jnp.zeros((in_pad, n_pad), w.dtype).at[:k, :n].set(w)
        b_p = jnp.zeros((1, n_pad), jnp.float32).at[:, :n].set(b.reshape(1, n))
        if compute_dtype is not None:
            w_p = w_p.astype(compute_dtype)
        padded.append((w_p, b_p))
        in_pad = n_pad
    n_last_pad = in_pad

    # ---- BlockSpecs: x/out tiled over batch, weights VMEM-resident ---------
    in_specs = [pl.BlockSpec((tm, k0_pad), lambda i: (i, 0))]
    flat_wb = []
    for (w_p, b_p) in padded:
        in_specs.append(pl.BlockSpec(w_p.shape, lambda i: (0, 0)))
        in_specs.append(pl.BlockSpec(b_p.shape, lambda i: (0, 0)))
        flat_wb.extend([w_p, b_p])
    out_spec = pl.BlockSpec((tm, n_last_pad), lambda i: (i, 0))

    # ---- advisory cost estimate ---------------------------------------------
    flops = 0
    transcendentals = 0
    kin = k0_pad
    for (w_p, _), act in zip(padded, activs):
        flops += 2 * m_pad * kin * w_p.shape[1]
        if act == "tanh":
            transcendentals += m_pad * w_p.shape[1]
        kin = w_p.shape[1]
    bytes_accessed = (
        x_pad.size * x_pad.dtype.itemsize
        + sum(a.size * a.dtype.itemsize for a in flat_wb)
        + m_pad * n_last_pad * x.dtype.itemsize
    )

    kernel = functools.partial(_mlp_fused_kernel, activations=tuple(activs))
    out_padded = pl.pallas_call(
        kernel,
        out_shape=jax.ShapeDtypeStruct((m_pad, n_last_pad), x.dtype),
        grid_spec=pltpu.PrefetchScalarGridSpec(
            num_scalar_prefetch=0,
            grid=(m_pad // tm,),
            in_specs=in_specs,
            out_specs=out_spec,
        ),
        compiler_params=pltpu.CompilerParams(
            dimension_semantics=("parallel",),
        ),
        cost_estimate=pl.CostEstimate(
            flops=flops,
            transcendentals=transcendentals,
            bytes_accessed=bytes_accessed,
        ),
    )(x_pad, *flat_wb)

    # slice away row / feature padding
    return out_padded[:M, :out_features]


def init_mlp_params(key, ori_input_size, layer_sizes):
    """Deterministic init mimicking nn.Linear defaults: U(-1/sqrt(fan_in), +)."""
    params = []
    in_size = ori_input_size
    for out_size in layer_sizes:
        key, kw, kb = jax.random.split(key, 3)
        bound = 1.0 / math.sqrt(in_size)
        w = jax.random.uniform(
            kw, (in_size, out_size), jnp.float32, minval=-bound, maxval=bound
        )
        b = jax.random.uniform(
            kb, (1, out_size), jnp.float32, minval=-bound, maxval=bound
        )
        params.append((w, b))
        in_size = out_size
    return params


def mlp_reference(x, params, activs):
    """Pure-JAX reference for the sanity check."""
    h = x
    for (w, b), act in zip(params, activs):
        h = h @ w + b
        if act == "relu":
            h = jnp.maximum(h, 0.0)
        elif act == "tanh":
            h = jnp.tanh(h)
        elif act == "leakyrelu":
            h = jnp.where(h >= 0.0, h, 0.2 * h)
    return h


if __name__ == "__main__":
    # Config consistent with MLP(ori_input_size, layer_sizes, activs, drop_ratio=0.0)
    ori_input_size = 32
    layer_sizes = [64, 64, 16]
    activs = ["relu", "tanh", "leakyrelu"]
    batch = 20   # deliberately not a multiple of 8 to exercise row padding

    key = jax.random.PRNGKey(0)
    key, kx = jax.random.split(key)
    x = jax.random.normal(kx, (batch, ori_input_size), dtype=jnp.float32)

    params = init_mlp_params(key, ori_input_size, layer_sizes)

    out = mlp_forward(x, params, activs)
    out = jax.block_until_ready(out)

    ref = mlp_reference(x, params, activs)
    assert out.shape == (batch, layer_sizes[-1])
    assert jnp.allclose(out, ref, atol=1e-5, rtol=1e-5), "mismatch vs reference"

    print("KERNEL_OK")
</pallas_src>

<mosaic_0001>
module attributes {stable_mosaic.version = 11 : i64} {
  func.func @_mlp_fused_kernel(%arg0: i32, %arg1: memref<24x128xf32, #tpu.memory_space<vmem>>, %arg2: memref<128x128xf32, #tpu.memory_space<vmem>>, %arg3: memref<1x128xf32, #tpu.memory_space<vmem>>, %arg4: memref<128x128xf32, #tpu.memory_space<vmem>>, %arg5: memref<1x128xf32, #tpu.memory_space<vmem>>, %arg6: memref<128x128xf32, #tpu.memory_space<vmem>>, %arg7: memref<1x128xf32, #tpu.memory_space<vmem>>, %arg8: memref<24x128xf32, #tpu.memory_space<vmem>>) attributes {dimension_semantics = [#tpu.dimension_semantics<parallel>], iteration_bounds = array<i64: 1>, scalar_prefetch = 0 : i64, scratch_operands = 0 : i64, tpu.core_type = #tpu.core_type<tc>, window_params = [{transform_indices = @transform_0, window_bounds = array<i64: 24, 128>}, {pipeline_mode = #tpu.pipeline_mode<synchronous>, transform_indices = @transform_1, window_bounds = array<i64: 128, 128>}, {pipeline_mode = #tpu.pipeline_mode<synchronous>, transform_indices = @transform_2, window_bounds = array<i64: 1, 128>}, {pipeline_mode = #tpu.pipeline_mode<synchronous>, transform_indices = @transform_3, window_bounds = array<i64: 128, 128>}, {pipeline_mode = #tpu.pipeline_mode<synchronous>, transform_indices = @transform_4, window_bounds = array<i64: 1, 128>}, {pipeline_mode = #tpu.pipeline_mode<synchronous>, transform_indices = @transform_5, window_bounds = array<i64: 128, 128>}, {pipeline_mode = #tpu.pipeline_mode<synchronous>, transform_indices = @transform_6, window_bounds = array<i64: 1, 128>}, {transform_indices = @transform_7, window_bounds = array<i64: 24, 128>}]} {
    %c0 = arith.constant 0 : index
    %c0_0 = arith.constant 0 : index
    %0 = vector.load %arg1[%c0, %c0_0] : memref<24x128xf32, #tpu.memory_space<vmem>>, vector<24x128xf32>
    %c0_1 = arith.constant 0 : index
    %c0_2 = arith.constant 0 : index
    %1 = vector.load %arg2[%c0_1, %c0_2] : memref<128x128xf32, #tpu.memory_space<vmem>>, vector<128x128xf32>
    %c0_3 = arith.constant 0 : index
    %c0_4 = arith.constant 0 : index
    %2 = vector.load %arg3[%c0_3, %c0_4] : memref<1x128xf32, #tpu.memory_space<vmem>>, vector<1x128xf32>
    %cst = arith.constant dense<0.000000e+00> : vector<24x128xf32>
    %3 = tpu.matmul %0, %1, %cst {dimension_numbers = #tpu.dot_dimension_numbers<[1], [0], [0], [1], [0, 0, 1, 1], [], []>} : vector<24x128xf32>, vector<128x128xf32>, vector<24x128xf32> -> vector<24x128xf32>
    %4 = vector.broadcast %2 : vector<1x128xf32> to vector<24x128xf32>
    %5 = arith.addf %3, %4 : vector<24x128xf32>
    %cst_5 = arith.constant 0.000000e+00 : f32
    %6 = vector.broadcast %cst_5 : f32 to vector<24x128xf32>
    %7 = arith.maximumf %5, %6 : vector<24x128xf32>
    %c0_6 = arith.constant 0 : index
    %c0_7 = arith.constant 0 : index
    %8 = vector.load %arg4[%c0_6, %c0_7] : memref<128x128xf32, #tpu.memory_space<vmem>>, vector<128x128xf32>
    %c0_8 = arith.constant 0 : index
    %c0_9 = arith.constant 0 : index
    %9 = vector.load %arg5[%c0_8, %c0_9] : memref<1x128xf32, #tpu.memory_space<vmem>>, vector<1x128xf32>
    %cst_10 = arith.constant dense<0.000000e+00> : vector<24x128xf32>
    %10 = tpu.matmul %7, %8, %cst_10 {dimension_numbers = #tpu.dot_dimension_numbers<[1], [0], [0], [1], [0, 0, 1, 1], [], []>} : vector<24x128xf32>, vector<128x128xf32>, vector<24x128xf32> -> vector<24x128xf32>
    %11 = vector.broadcast %9 : vector<1x128xf32> to vector<24x128xf32>
    %12 = arith.addf %10, %11 : vector<24x128xf32>
    %13 = math.tanh %12 : vector<24x128xf32>
    %c0_11 = arith.constant 0 : index
    %c0_12 = arith.constant 0 : index
    %14 = vector.load %arg6[%c0_11, %c0_12] : memref<128x128xf32, #tpu.memory_space<vmem>>, vector<128x128xf32>
    %c0_13 = arith.constant 0 : index
    %c0_14 = arith.constant 0 : index
    %15 = vector.load %arg7[%c0_13, %c0_14] : memref<1x128xf32, #tpu.memory_space<vmem>>, vector<1x128xf32>
    %cst_15 = arith.constant dense<0.000000e+00> : vector<24x128xf32>
    %16 = tpu.matmul %13, %14, %cst_15 {dimension_numbers = #tpu.dot_dimension_numbers<[1], [0], [0], [1], [0, 0, 1, 1], [], []>} : vector<24x128xf32>, vector<128x128xf32>, vector<24x128xf32> -> vector<24x128xf32>
    %17 = vector.broadcast %15 : vector<1x128xf32> to vector<24x128xf32>
    %18 = arith.addf %16, %17 : vector<24x128xf32>
    %cst_16 = arith.constant 0.000000e+00 : f32
    %19 = vector.broadcast %cst_16 : f32 to vector<24x128xf32>
    %20 = arith.cmpf oge, %18, %19 : vector<24x128xf32>
    %cst_17 = arith.constant 2.000000e-01 : f32
    %21 = vector.broadcast %cst_17 : f32 to vector<24x128xf32>
    %22 = arith.mulf %21, %18 : vector<24x128xf32>
    %23 = arith.select %20, %18, %22 : vector<24x128xi1>, vector<24x128xf32>
    %c0_18 = arith.constant 0 : index
    %c0_19 = arith.constant 0 : index
    %24 = vector.load %arg8[%c0_18, %c0_19] : memref<24x128xf32, #tpu.memory_space<vmem>>, vector<24x128xf32>
    tpu.vector_store %arg8[%c0_18, %c0_19], %23 {strides = array<i32>} : memref<24x128xf32, #tpu.memory_space<vmem>>, vector<24x128xf32>,
    return
  }
  func.func @transform_0(%arg0: i32) -> (i32, i32) {
    %c0_i32 = arith.constant 0 : i32
    %c0_i32_0 = arith.constant 0 : i32
    return %arg0, %c0_i32 : i32, i32
  }
  func.func @transform_1(%arg0: i32) -> (i32, i32) {
    %c0_i32 = arith.constant 0 : i32
    %c0_i32_0 = arith.constant 0 : i32
    %c0_i32_1 = arith.constant 0 : i32
    return %c0_i32, %c0_i32_0 : i32, i32
  }
  func.func @transform_2(%arg0: i32) -> (i32, i32) {
    %c0_i32 = arith.constant 0 : i32
    %c0_i32_0 = arith.constant 0 : i32
    %c0_i32_1 = arith.constant 0 : i32
    return %c0_i32, %c0_i32_0 : i32, i32
  }
  func.func @transform_3(%arg0: i32) -> (i32, i32) {
    %c0_i32 = arith.constant 0 : i32
    %c0_i32_0 = arith.constant 0 : i32
    %c0_i32_1 = arith.constant 0 : i32
    return %c0_i32, %c0_i32_0 : i32, i32
  }
  func.func @transform_4(%arg0: i32) -> (i32, i32) {
    %c0_i32 = arith.constant 0 : i32
    %c0_i32_0 = arith.constant 0 : i32
    %c0_i32_1 = arith.constant 0 : i32
    return %c0_i32, %c0_i32_0 : i32, i32
  }
  func.func @transform_5(%arg0: i32) -> (i32, i32) {
    %c0_i32 = arith.constant 0 : i32
    %c0_i32_0 = arith.constant 0 : i32
    %c0_i32_1 = arith.constant 0 : i32
    return %c0_i32, %c0_i32_0 : i32, i32
  }
  func.func @transform_6(%arg0: i32) -> (i32, i32) {
    %c0_i32 = arith.constant 0 : i32
    %c0_i32_0 = arith.constant 0 : i32
    %c0_i32_1 = arith.constant 0 : i32
    return %c0_i32, %c0_i32_0 : i32, i32
  }
  func.func @transform_7(%arg0: i32) -> (i32, i32) {
    %c0_i32 = arith.constant 0 : i32
    %c0_i32_0 = arith.constant 0 : i32
    return %arg0, %c0_i32 : i32, i32
  }
}

</mosaic_0001>

<bundles_post_ra>
// kernel: tpu_custom_call.1
= control target key start
LH: loop header
LB: loop body
LE: loop exit
PB: predicated region body
PF: predicated region fallthrough
CT: control target
= control target key end

     0   :  { %12 = vsyncpa [#allocation3], 0  ;;  %s1034_s0 = inlined_call_operand.hbm [shape: f32[24,128], index: 0, kind: input, shape index: {}]   ;;  %s1035_s1 = inlined_call_operand.hbm [shape: f32[128,128], index: 1, kind: input, shape index: {}]   ;;  %s1036_s2 = inlined_call_operand.vmem [shape: f32[1,128], index: 2, kind: input, shape index: {}]   ;;  %s1037_s3 = inlined_call_operand.hbm [shape: f32[128,128], index: 3, kind: input, shape index: {}]   ;;  %s1038_s4 = inlined_call_operand.vmem [shape: f32[1,128], index: 4, kind: input, shape index: {}]   ;;  %s1039_s5 = inlined_call_operand.hbm [shape: f32[128,128], index: 5, kind: input, shape index: {}]   ;;  %s1040_s6 = inlined_call_operand.vmem [shape: f32[1,128], index: 6, kind: input, shape index: {}]   ;;  %s1041_s7 = inlined_call_operand.hbm [shape: f32[24,128], index: 7, kind: output, shape index: {}]  }
   0x1   :  { %13 = vsyncpa [#allocation6], 0 }
   0x2   :  { %14 = vsyncpa [#allocation9], 0 }
   0x3   :  { %15 = vsyncpa [#allocation4], 0  ;;  %s836_s24 = smov [#allocation5]   ;;  %s837_s26 = smov [#allocation2]  }
   0x4   :  { %s33_s25 = sshll.u32 %s836_s24, 4  ;;  %s21_s27 = sshll.u32 %s837_s26, 4  ;;  %s34_s25 = int_to_ptr.vmem [resolvable:$true] %s33_s25  ;;  %s886_s27 = int_to_ptr.vmem [resolvable:$true] %s21_s27 }
   0x5   :  { %s718_s30 = scalar_lea.hbm %s1035_s1, 2048 }
   0x6   :  { %p719_p0 = scmp.ne.s32.totalorder %s1035_s1, %s718_s30  ;;  %p722_p1 = scmp.lt.u32.totalorder %s718_s30, %s1035_s1 }
   0x8   :  { %p724_p2 = pnand %p722_p1, %p719_p0 }
   0xa   :  { %727 = shalt.err (!%p724_p2)
}
   0xb   :  { %s728_s12 = scalar_lea.vmem %s34_s25, 2048  ;;  %p733_p4 = scmp.lt.s32.totalorder %s34_s25, %s34_s25 }
   0xc   :  { %p729_p3 = scmp.ne.s32.totalorder %s34_s25, %s728_s12  ;;  %p734_p5 = scmp.lt.s32.totalorder %s728_s12, %s728_s12 }
   0xe   :  { %p735_p6 = por %p734_p5, %p733_p4 }
  0x10   :  { %p736_p7 = pnand %p735_p6, %p729_p3 }
  0x12   :  { %739 = shalt.err (!%p736_p7)
}
  0x13   :  { %s838_s13 = smov 128   ;;  %s839_s14 = smov 8  }
  0x14   :  { %39 = dma.hbm_to_vmem [thread:$0]  %s1035_s1, 2048, %s34_s25, [#allocation6], %s838_s13, %s838_s13, %s839_s14  }
  0x15   :  { %s740_s19 = scalar_lea.hbm %s1034_s0, 384 }
  0x16   :  { %p741_p8 = scmp.ne.s32.totalorder %s1034_s0, %s740_s19  ;;  %p744_p9 = scmp.lt.u32.totalorder %s740_s19, %s1034_s0 }
  0x18   :  { %p746_p10 = pnand %p744_p9, %p741_p8 }
  0x1a   :  { %749 = shalt.err (!%p746_p10)
}
  0x1b   :  { %s750_s24 = scalar_lea.vmem %s886_s27, 384  ;;  %p755_p12 = scmp.lt.s32.totalorder %s886_s27, %s886_s27 }
  0x1c   :  { %p751_p11 = scmp.ne.s32.totalorder %s886_s27, %s750_s24  ;;  %p756_p13 = scmp.lt.s32.totalorder %s750_s24, %s750_s24 }
  0x1e   :  { %p757_p0 = por %p756_p13, %p755_p12 }
  0x20   :  { %p758_p1 = pnand %p757_p0, %p751_p11 }
  0x22   :  { %761 = shalt.err (!%p758_p1)
}
  0x23   :  { %27 = dma.hbm_to_vmem [thread:$0]  %s1034_s0, 384, %s886_s27, [#allocation3], %s838_s13, %s838_s13, %s839_s14  }
  0x24   :  { %s840_s26 = smov [#allocation7]   ;;  %s841_s29 = smov [#allocation8]  }
  0x25   :  { %s47_s28 = sshll.u32 %s840_s26, 4  ;;  %s61_s30 = sshll.u32 %s841_s29, 4  ;;  %s48_s28 = int_to_ptr.vmem [resolvable:$true] %s47_s28  ;;  %s923_s30 = int_to_ptr.vmem [resolvable:$true] %s61_s30 }
  0x26   :  { %s762_s10 = scalar_lea.hbm %s1037_s3, 2048 }
  0x27   :  { %p763_p2 = scmp.ne.s32.totalorder %s1037_s3, %s762_s10  ;;  %p766_p3 = scmp.lt.u32.totalorder %s762_s10, %s1037_s3 }
  0x29   :  { %p768_p4 = pnand %p766_p3, %p763_p2 }
  0x2b   :  { %771 = shalt.err (!%p768_p4)
}
  0x2c   :  { %s772_s0 = scalar_lea.vmem %s48_s28, 2048  ;;  %p777_p6 = scmp.lt.s32.totalorder %s48_s28, %s48_s28 }
  0x2d   :  { %p773_p5 = scmp.ne.s32.totalorder %s48_s28, %s772_s0  ;;  %p778_p7 = scmp.lt.s32.totalorder %s772_s0, %s772_s0 }
  0x2f   :  { %p779_p8 = por %p778_p7, %p777_p6 }
  0x31   :  { %p780_p9 = pnand %p779_p8, %p773_p5 }
  0x33   :  { %783 = shalt.err (!%p780_p9)
}
  0x34   :  { %53 = dma.hbm_to_vmem [thread:$0]  %s1037_s3, 2048, %s48_s28, [#allocation6], %s838_s13, %s838_s13, %s839_s14  }
  0x35   :  { %s784_s20 = scalar_lea.hbm %s1039_s5, 2048 }
  0x36   :  { %p785_p10 = scmp.ne.s32.totalorder %s1039_s5, %s784_s20  ;;  %p788_p11 = scmp.lt.u32.totalorder %s784_s20, %s1039_s5 }
  0x38   :  { %p790_p12 = pnand %p788_p11, %p785_p10 }
  0x3a   :  { %793 = shalt.err (!%p790_p12)
}
  0x3b   :  { %s794_s1 = scalar_lea.vmem %s923_s30, 2048  ;;  %p799_p0 = scmp.lt.s32.totalorder %s923_s30, %s923_s30 }
  0x3c   :  { %p795_p13 = scmp.ne.s32.totalorder %s923_s30, %s794_s1  ;;  %p800_p1 = scmp.lt.s32.totalorder %s794_s1, %s794_s1 }
  0x3e   :  { %p801_p2 = por %p800_p1, %p799_p0 }
  0x40   :  { %p802_p3 = pnand %p801_p2, %p795_p13 }
  0x42   :  { %805 = shalt.err (!%p802_p3)
}
  0x43   :  { %67 = dma.hbm_to_vmem [thread:$0]  %s1039_s5, 2048, %s923_s30, [#allocation9], %s838_s13, %s838_s13, %s839_s14  }
  0x44   :  { %828 = dma.done.wait [#allocation3], 384  }
  0x45   :  { %829 = vsyncadd [#allocation3], 4294966912 }
  0x46   :  { %830 = dma.done.wait [#allocation6], 4096  }
  0x47   :  { %831 = vsyncadd [#allocation6], 4294963200 }
  0x48   :  { %832 = dma.done.wait [#allocation9], 2048  }
  0x49   :  { %833 = vsyncadd [#allocation9], 4294965248  ;;  %v842_v0 = vmov 0.0|0.0   ;;  %vm843_vm0 = vmmov 0   ;;  %v844_v1 = vmov 0.0   ;;  %v85_v2 = vld [vmem:[#allocation5] sm:$0xff] }
  0x4a   :  { %614 = vmatprep.subr.bf16.mxu0 %v842_v0  ;;  %523 = vmatprep.mubr.msk.f32.mxu0 %vm843_vm0, %v844_v1  ;;  %v86_v3 = vld [vmem:[#allocation5 + $0x8] sm:$0xff]  ;;  %v87_v4 = vld [vmem:[#allocation5 + $0x10] sm:$0xff]  ;;  %v88_v6 = vld [vmem:[#allocation5 + $0x18] sm:$0xff]  ;;  %s845_s30 = smov [#allocation10]  }
  0x4b   :  { %638 = vmatprep.subr.bf16.mxu1 %v842_v0  ;;  %564 = vmatprep.mubr.msk.f32.mxu1 %vm843_vm0, %v844_v1  ;;  %v615_v5 = vpack.c.bf16 %v86_v3, %v85_v2  ;;  %v618_v7 = vpack.c.bf16 %v88_v6, %v87_v4  ;;  %v89_v8 = vld [vmem:[#allocation5 + $0x20] sm:$0xff]  ;;  %v90_v9 = vld [vmem:[#allocation5 + $0x28] sm:$0xff]  ;;  %v193_v14 = vld [vmem:[#allocation7 + $0x10] sm:$0xff]  ;;  %s417_s8 = sshll.u32 %s845_s30, 4  ;;  %s418_s8 = int_to_ptr.vmem [resolvable:$true] %s417_s8 }
  0x4c   :  { %v191_v10 = vld [vmem:[#allocation7] sm:$0xff]  ;;  %v192_v11 = vld [vmem:[#allocation7 + $0x8] sm:$0xff]  ;;  %v621_v12 = vpack.c.bf16 %v90_v9, %v89_v8  ;;  %v194_v15 = vld [vmem:[#allocation7 + $0x18] sm:$0xff]  ;;  %p811_p5 = scmp.lt.s32.totalorder %s418_s8, %s418_s8 }
  0x4d   :  { %616 = vmatpush3.bf16.msra.mxu0 %v615_v5  ;;  %v639_v13 = vpack.c.bf16 %v192_v11, %v191_v10  ;;  %v91_v16 = vld [vmem:[#allocation5 + $0x30] sm:$0xff]  ;;  %v92_v17 = vld [vmem:[#allocation5 + $0x38] sm:$0xff]  ;;  %v642_v18 = vpack.c.bf16 %v194_v15, %v193_v14  ;;  %v195_v19 = vld [vmem:[#allocation7 + $0x20] sm:$0xff] }
  0x4e   :  { %617 = vmatprep.subr.bf16.mxu0 %v842_v0  ;;  %v196_v20 = vld [vmem:[#allocation7 + $0x28] sm:$0xff]  ;;  %v624_v21 = vpack.c.bf16 %v92_v17, %v91_v16  ;;  %v93_v22 = vld [vmem:[#allocation5 + $0x40] sm:$0xff]  ;;  %v197_v25 = vld [vmem:[#allocation7 + $0x30] sm:$0xff] }
  0x4f   :  { %640 = vmatpush3.bf16.msra.mxu1 %v639_v13  ;;  %v94_v23 = vld [vmem:[#allocation5 + $0x48] sm:$0xff]  ;;  %v645_v24 = vpack.c.bf16 %v196_v20, %v195_v19  ;;  %v198_v26 = vld [vmem:[#allocation7 + $0x38] sm:$0xff]  ;;  %v95_v28 = vld [vmem:[#allocation5 + $0x50] sm:$0xff] }
  0x50   :  { %641 = vmatprep.subr.bf16.mxu1 %v842_v0  ;;  %v627_v27 = vpack.c.bf16 %v94_v23, %v93_v22  ;;  %v96_v29 = vld [vmem:[#allocation5 + $0x58] sm:$0xff]  ;;  %v648_v30 = vpack.c.bf16 %v198_v26, %v197_v25  ;;  %v199_v31 = vld [vmem:[#allocation7 + $0x40] sm:$0xff]  ;;  %v200_v32 = vld [vmem:[#allocation7 + $0x48] sm:$0xff] }
  0x51   :  { %619 = vmatpush3.bf16.msra.mxu0 %v618_v7  ;;  %v630_v33 = vpack.c.bf16 %v96_v29, %v95_v28  ;;  %v97_v34 = vld [vmem:[#allocation5 + $0x60] sm:$0xff]  ;;  %v98_v35 = vld [vmem:[#allocation5 + $0x68] sm:$0xff]  ;;  %v651_v36 = vpack.c.bf16 %v200_v32, %v199_v31  ;;  %v201_v37 = vld [vmem:[#allocation7 + $0x50] sm:$0xff] }
  0x52   :  { %620 = vmatprep.subr.bf16.mxu0 %v842_v0  ;;  %v202_v38 = vld [vmem:[#allocation7 + $0x58] sm:$0xff]  ;;  %v633_v39 = vpack.c.bf16 %v98_v35, %v97_v34  ;;  %v99_v40 = vld [vmem:[#allocation5 + $0x70] sm:$0xff]  ;;  %v203_v43 = vld [vmem:[#allocation7 + $0x60] sm:$0xff] }
  0x53   :  { %643 = vmatpush3.bf16.msra.mxu1 %v642_v18  ;;  %v100_v41 = vld [vmem:[#allocation5 + $0x78] sm:$0xff]  ;;  %v654_v42 = vpack.c.bf16 %v202_v38, %v201_v37  ;;  %v204_v44 = vld [vmem:[#allocation7 + $0x68] sm:$0xff]  ;;  %v83_v48 = vld [vmem:[#allocation2 + $0x8] sm:$0xff] }
  0x54   :  { %644 = vmatprep.subr.bf16.mxu1 %v842_v0  ;;  %v636_v45 = vpack.c.bf16 %v100_v41, %v99_v40  ;;  %v657_v46 = vpack.c.bf16 %v204_v44, %v203_v43  ;;  %v82_v47 = vld [vmem:[#allocation2] sm:$0xff]  ;;  %v84_v49 = vld [vmem:[#allocation2 + $0x10] sm:$0xff]  ;;  %v205_v50 = vld [vmem:[#allocation7 + $0x70] sm:$0xff] }
  0x55   :  { %622 = vmatpush3.bf16.msra.mxu0 %v621_v12  ;;  %v206_v51 = vld [vmem:[#allocation7 + $0x78] sm:$0xff]  ;;  %v297_v53 = vld [vmem:[#allocation8] sm:$0xff]  ;;  %v298_v54 = vld [vmem:[#allocation8 + $0x8] sm:$0xff] }
  0x56   :  { %623 = vmatprep.subr.bf16.mxu0 %v842_v0  ;;  %v660_v52 = vpack.c.bf16 %v206_v51, %v205_v50  ;;  %v299_v55 = vld [vmem:[#allocation8 + $0x10] sm:$0xff]  ;;  %v663_v56 = vpack.c.bf16 %v298_v54, %v297_v53  ;;  %v300_v57 = vld [vmem:[#allocation8 + $0x18] sm:$0xff]  ;;  %v301_v59 = vld [vmem:[#allocation8 + $0x20] sm:$0xff] }
  0x57   :  { %646 = vmatpush3.bf16.msra.mxu1 %v645_v24  ;;  %v666_v58 = vpack.c.bf16 %v300_v57, %v299_v55  ;;  %v302_v60 = vld [vmem:[#allocation8 + $0x28] sm:$0xff]  ;;  %v303_v62 = vld [vmem:[#allocation8 + $0x30] sm:$0xff]  ;;  %v304_v63 = vld [vmem:[#allocation8 + $0x38] sm:$0xff] }
  0x58   :  { %647 = vmatprep.subr.bf16.mxu1 %v842_v0  ;;  %v669_v61 = vpack.c.bf16 %v302_v60, %v301_v59  ;;  %v672_v2 = vpack.c.bf16 %v304_v63, %v303_v62  ;;  %v305_v3 = vld [vmem:[#allocation8 + $0x40] sm:$0xff]  ;;  %v306_v4 = vld [vmem:[#allocation8 + $0x48] sm:$0xff]  ;;  %v307_v19 = vld [vmem:[#allocation8 + $0x50] sm:$0xff] }
  0x59   :  { %625 = vmatpush3.bf16.msra.mxu0 %v624_v21  ;;  %v675_v5 = vpack.c.bf16 %v306_v4, %v305_v3  ;;  %v431_v6 = vld [vmem:[%s1036_s2] ss:$0 sm:$0xff]  ;;  %v308_v20 = vld [vmem:[#allocation8 + $0x58] sm:$0xff]  ;;  %v309_v22 = vld [vmem:[#allocation8 + $0x60] sm:$0xff] }
  0x5a   :  { %626 = vmatprep.subr.bf16.mxu0 %v842_v0  ;;  %v678_v21 = vpack.c.bf16 %v308_v20, %v307_v19  ;;  %v310_v23 = vld [vmem:[#allocation8 + $0x68] sm:$0xff]  ;;  %v311_v25 = vld [vmem:[#allocation8 + $0x70] sm:$0xff]  ;;  %v312_v26 = vld [vmem:[#allocation8 + $0x78] sm:$0xff] }
  0x5b   :  { %649 = vmatpush3.bf16.msra.mxu1 %v648_v30  ;;  %v681_v24 = vpack.c.bf16 %v310_v23, %v309_v22  ;;  %v432_v28 = vld [vmem:[%s1038_s4] ss:$0 sm:$0xff] }
  0x5c   :  { %650 = vmatprep.subr.bf16.mxu1 %v842_v0  ;;  %v433_v40 = vld [vmem:[%s1040_s6] ss:$0 sm:$0xff]  ;;  %s806_s6 = scalar_lea.vmem %s418_s8, 384 }
  0x5d   :  { %628 = vmatpush3.bf16.msra.mxu0 %v627_v27  ;;  %v684_v27 = vpack.c.bf16 %v312_v26, %v311_v25  ;;  %p807_p4 = scmp.ne.s32.totalorder %s418_s8, %s806_s6  ;;  %p812_p6 = scmp.lt.s32.totalorder %s806_s6, %s806_s6 }
  0x5e   :  { %629 = vmatprep.subr.bf16.mxu0 %v842_v0 }
  0x5f   :  { %652 = vmatpush3.bf16.msra.mxu1 %v651_v36  ;;  %p813_p7 = por %p812_p6, %p811_p5 }
  0x60   :  { %653 = vmatprep.subr.bf16.mxu1 %v842_v0 }
  0x61   :  { %631 = vmatpush3.bf16.msra.mxu0 %v630_v33  ;;  %p814_p8 = pnand %p813_p7, %p807_p4 }
  0x62   :  { %632 = vmatprep.subr.bf16.mxu0 %v842_v0 }
  0x63   :  { %655 = vmatpush3.bf16.msra.mxu1 %v654_v42 }
  0x64   :  { %656 = vmatprep.subr.bf16.mxu1 %v842_v0 }
  0x65   :  { %634 = vmatpush3.bf16.msra.mxu0 %v633_v39 }
  0x66   :  { %635 = vmatprep.subr.bf16.mxu0 %v842_v0 }
  0x67   :  { %658 = vmatpush3.bf16.msra.mxu1 %v657_v46 }
  0x68   :  { %659 = vmatprep.subr.bf16.mxu1 %v842_v0 }
  0x69   :  { %637 = vmatpush3.bf16.msra.mxu0 %v636_v45 }
  0x6a   :  { %662 = vmatprep.subr.bf16.mxu0 %v842_v0 }
  0x6b   :  { %661 = vmatpush3.bf16.msra.mxu1 %v660_v52 }
  0x6c   :  { %524 = vmatmul.mubr.f32.vlgmr.msra.gmra.mrb[0].mxu0 %v82_v47  ;;  %686 = vmatprep.subr.bf16.mxu1 %v842_v0 }
  0x6d   :  { %526 = vmatprep.mubr.msk.f32.mxu0 %vm843_vm0, %v844_v1  ;;  %664 = vmatpush3.bf16.msra.mxu0 %v663_v56 }
  0x6e   :  { %665 = vmatprep.subr.bf16.mxu0 %v842_v0 }
  0x70   :  { %527 = vmatmul.mubr.f32.gmra.mrb[2].mxu0 %v83_v48 }
  0x71   :  { %529 = vmatprep.mubr.msk.f32.mxu0 %vm843_vm0, %v844_v1  ;;  %667 = vmatpush3.bf16.msra.mxu0 %v666_v58 }
  0x72   :  { %668 = vmatprep.subr.bf16.mxu0 %v842_v0 }
  0x74   :  { %530 = vmatmul.mubr.f32.gmra.mrb[4].mxu0 %v84_v49 }
  0x75   :  { %605 = vmatprep.mubr.msk.f32.mxu0 %vm843_vm0, %v844_v1  ;;  %670 = vmatpush3.bf16.msra.mxu0 %v669_v61 }
  0x76   :  { %671 = vmatprep.subr.bf16.mxu0 %v842_v0 }
  0x79   :  { %673 = vmatpush3.bf16.msra.mxu0 %v672_v2 }
  0x7a   :  { %674 = vmatprep.subr.bf16.mxu0 %v842_v0 }
  0x7d   :  { %676 = vmatpush3.bf16.msra.mxu0 %v675_v5 }
  0x7e   :  { %677 = vmatprep.subr.bf16.mxu0 %v842_v0 }
  0x81   :  { %679 = vmatpush3.bf16.msra.mxu0 %v678_v21 }
  0x82   :  { %680 = vmatprep.subr.bf16.mxu0 %v842_v0 }
  0x85   :  { %682 = vmatpush3.bf16.msra.mxu0 %v681_v24 }
  0x86   :  { %683 = vmatprep.subr.bf16.mxu0 %v842_v0 }
  0x89   :  { %685 = vmatpush3.bf16.msra.mxu0 %v684_v27 }
 0x13f   :  { %v174_v7 = vpop.f32.mrb[0].mxu0 }
 0x140   :  { %v175_v8 = vadd.f32 %v431_v6, %v174_v7  ;;  %v525_v9 = vpop.f32.mrb[1].mxu0 }
 0x142   :  { %v188_v10 = vmax.f32 %v175_v8, 0.0 }
 0x143   :  { %v179_v11 = vpop.f32.mrb[2].mxu0 }
 0x144   :  { %v180_v12 = vadd.f32 %v431_v6, %v179_v11  ;;  %v528_v13 = vpop.f32.mrb[3].mxu0  ;;  %565 = vmatmul.mubr.f32.vlgmr.msra.gmra.mrb[0].mxu1 %v188_v10 }
 0x145   :  { %567 = vmatprep.mubr.msk.f32.mxu1 %vm843_vm0, %v844_v1  ;;  %694 = vmatpush3.bf16.msra.mxu1 %v663_v56 }
 0x146   :  { %v189_v14 = vmax.f32 %v180_v12, 0.0  ;;  %687 = vmatprep.subr.bf16.mxu1 %v842_v0 }
 0x147   :  { %v184_v15 = vpop.f32.mrb[4].mxu0 }
 0x148   :  { %v185_v16 = vadd.f32 %v431_v6, %v184_v15  ;;  %v531_v17 = vpop.f32.mrb[5].mxu0  ;;  %568 = vmatmul.mubr.f32.gmra.mrb[2].mxu1 %v189_v14 }
 0x149   :  { %570 = vmatprep.mubr.msk.f32.mxu1 %vm843_vm0, %v844_v1  ;;  %695 = vmatpush3.bf16.msra.mxu1 %v666_v58 }
 0x14a   :  { %v190_v18 = vmax.f32 %v185_v16, 0.0  ;;  %688 = vmatprep.subr.bf16.mxu1 %v842_v0 }
 0x14c   :  { %571 = vmatmul.mubr.f32.gmra.mrb[4].mxu1 %v190_v18 }
 0x14d   :  { %696 = vmatpush3.bf16.msra.mxu1 %v669_v61  ;;  %608 = vmatprep.mubr.msk.f32.mxu1 %vm843_vm0, %v844_v1 }
 0x14e   :  { %689 = vmatprep.subr.bf16.mxu1 %v842_v0 }
 0x151   :  { %697 = vmatpush3.bf16.msra.mxu1 %v672_v2 }
 0x152   :  { %690 = vmatprep.subr.bf16.mxu1 %v842_v0 }
 0x155   :  { %698 = vmatpush3.bf16.msra.mxu1 %v675_v5 }
 0x156   :  { %691 = vmatprep.subr.bf16.mxu1 %v842_v0 }
 0x159   :  { %699 = vmatpush3.bf16.msra.mxu1 %v678_v21 }
 0x15a   :  { %692 = vmatprep.subr.bf16.mxu1 %v842_v0 }
 0x15d   :  { %700 = vmatpush3.bf16.msra.mxu1 %v681_v24 }
 0x15e   :  { %693 = vmatprep.subr.bf16.mxu1 %v842_v0 }
 0x161   :  { %701 = vmatpush3.bf16.msra.mxu1 %v684_v27 }
 0x217   :  { %v280_v29 = vpop.f32.mrb[0].mxu1 }
 0x218   :  { %v281_v30 = vadd.f32 %v432_v28, %v280_v29  ;;  %v566_v31 = vpop.f32.mrb[1].mxu1 }
 0x21a   :  { %712 = vtanh.f32 %v281_v30 }
 0x21b   :  { %v285_v32 = vpop.f32.mrb[2].mxu1 }
 0x21c   :  { %v286_v33 = vadd.f32 %v432_v28, %v285_v32  ;;  %v569_v34 = vpop.f32.mrb[3].mxu1 }
 0x21e   :  { %714 = vtanh.f32 %v286_v33 }
 0x21f   :  { %v290_v35 = vpop.f32.mrb[4].mxu1 }
 0x220   :  { %v291_v36 = vadd.f32 %v432_v28, %v290_v35  ;;  %v572_v37 = vpop.f32.mrb[5].mxu1 }
 0x222   :  { %716 = vtanh.f32 %v291_v36 }
 0x224   :  { %v713_v0 = vpop.eup %712 }
 0x225   :  { %606 = vmatmul.mubr.f32.vlgmr.msra.gmra.mrb[6].mxu0 %v713_v0 }
 0x228   :  { %v715_v38 = vpop.eup %714 }
 0x229   :  { %609 = vmatmul.mubr.f32.vlgmr.msra.gmra.mrb[6].mxu1 %v715_v38 }
 0x22a   :  { %611 = vmatprep.mubr.msk.f32.mxu1 %vm843_vm0, %v844_v1 }
 0x22c   :  { %v717_v39 = vpop.eup %716 }
 0x22d   :  { %612 = vmatmul.mubr.f32.gmra.mrb[8].mxu1 %v717_v39 }
 0x2f8   :  { %v386_v41 = vpop.f32.mrb[6].mxu0 }
 0x2f9   :  { %v387_v42 = vadd.f32 %v433_v40, %v386_v41  ;;  %v607_v43 = vpop.f32.mrb[7].mxu0 }
 0x2fb   :  { %vm400_vm1 = vcmp.ge.f32.partialorder %v387_v42, 0.0  ;;  %v403_v44 = vmul.f32 0.2, %v387_v42 }
 0x2fc   :  { %v391_v45 = vpop.f32.mrb[6].mxu1 }
 0x2fd   :  { %v406_v46 = vsel %vm400_vm1, %v387_v42, %v403_v44  ;;  %v392_v47 = vadd.f32 %v433_v40, %v391_v45  ;;  %v610_v48 = vpop.f32.mrb[7].mxu1 }
 0x2fe   :  { %409 = vst [vmem:[#allocation10] sm:$0xff] %v406_v46 }
 0x2ff   :  { %vm401_vm2 = vcmp.ge.f32.partialorder %v392_v47, 0.0  ;;  %v404_v49 = vmul.f32 0.2, %v392_v47 }
 0x300   :  { %v396_v50 = vpop.f32.mrb[8].mxu1 }
 0x301   :  { %v407_v1 = vsel %vm401_vm2, %v392_v47, %v404_v49  ;;  %v397_v51 = vadd.f32 %v433_v40, %v396_v50  ;;  %v613_v52 = vpop.f32.mrb[9].mxu1 }
 0x302   :  { %410 = vst [vmem:[#allocation10 + $0x8] sm:$0xff] %v407_v1 }
 0x303   :  { %vm402_vm3 = vcmp.ge.f32.partialorder %v397_v51, 0.0  ;;  %v405_v53 = vmul.f32 0.2, %v397_v51 }
 0x305   :  { %v408_v54 = vsel %vm402_vm3, %v397_v51, %v405_v53 }
 0x306   :  { %411 = vst [vmem:[#allocation10 + $0x10] sm:$0xff] %v408_v54 }
 0x307   :  { %817 = shalt.err (!%p814_p8)
}
 0x308   :  { %s818_s11 = scalar_lea.hbm %s1041_s7, 384 }
 0x309   :  { %p819_p9 = scmp.ne.s32.totalorder %s1041_s7, %s818_s11  ;;  %p822_p10 = scmp.lt.u32.totalorder %s818_s11, %s1041_s7 }
 0x30b   :  { %p824_p11 = pnand %p822_p10, %p819_p9 }
 0x30d   :  { %827 = shalt.err (!%p824_p11)
}
 0x30e   :  { %423 = dma.vmem_to_hbm [thread:$0]  %s418_s8, 384, %s1041_s7, [#allocation4], %s838_s13, %s838_s13, %s839_s14  }
 0x30f   :  { %834 = dma.done.wait [#allocation4], 384  }
 0x310   :  { %835 = vsyncadd [#allocation4], 4294966912 }
 0x311   :  { %427 = vsyncpa [#allocation3], 1 }
 0x312   :  { %428 = vsyncpa [#allocation6], 1 }
 0x313   :  { %429 = vsyncpa [#allocation9], 1 }
 0x314   :  { %430 = vsyncpa [#allocation4], 1 }

</bundles_post_ra>
